<compile_context>
chip_gen: v7x
topology: tpu7x:2x2x1
jax: 0.10.0
libtpu: 0.0.40
codegen_flags: <defaults>
</compile_context>

<pallas_src>
import numpy as np
import jax
import jax.numpy as jnp
from jax.experimental import pallas as pl
from jax.experimental.pallas import tpu as pltpu

LANE = 128   # TPU lane width: hidden/output dims padded to this for dense lanes
SUB_B = 16   # bf16 sublane packing: keep batch tiles multiples of 16


def _round_up(n, m):
    return ((n + m - 1) // m) * m


def _cdiv(a, b):
    return -(-a // b)


# ----------------------------- Pallas kernel ------------------------------- #
def policy_net_kernel(x_ref, w1_ref, w2_ref, w3_ref, b_ref, out_ref):
    """Fused 3-layer MLP forward on one batch tile.

    MXU matmuls take bf16 operands with f32 accumulation; bias adds stay in
    f32 on the VPU and tanh runs on the EUP. Activations are downcast to bf16
    right after tanh to keep intermediates half-width.
    """
    b1 = b_ref[0:1, :]                                               # [1, 128]
    b2 = b_ref[1:2, :]
    b3 = b_ref[2:3, :]

    h1 = jnp.tanh(
        jnp.dot(x_ref[...], w1_ref[...], preferred_element_type=jnp.float32)
        + b1).astype(jnp.bfloat16)                                   # [TB, 128]
    h2 = jnp.tanh(
        jnp.dot(h1, w2_ref[...], preferred_element_type=jnp.float32)
        + b2).astype(jnp.bfloat16)                                   # [TB, 128]
    logits = (jnp.dot(h2, w3_ref[...], preferred_element_type=jnp.float32)
              + b3)                                                  # [TB, 128]
    out_ref[...] = logits.astype(out_ref.dtype)                      # bf16, lane-dense store


def policy_net_forward(x, padded_params, out_size, *, tile_b=1024):
    """Run the fused kernel over a batch grid.

    x:              [B, in_size] (f32 or bf16)
    padded_params:  (w1, w2, w3, biases) from pad_params(): bf16 weights stored
                    as [in, out], biases packed into one f32 (8, 128) array.
    Returns         [B, out_size] f32 logits.
    """
    w1, w2, w3, biases = padded_params
    B, in_size = x.shape
    h_pad = w1.shape[1]
    o_pad = w3.shape[1]

    # bf16 input stream halves x DMA bytes; the cast fuses with the pad below.
    x = x.astype(jnp.bfloat16)

    # Batch tiling: cap at tile_b, then shrink the tile so it evenly covers the
    # (16-rounded) batch -> tail padding is < 16 rows per tile instead of up to
    # tile_b-1 wasted rows of matmul/tanh/writeback.
    b16 = _round_up(B, SUB_B)
    tb = min(_round_up(tile_b, SUB_B), b16)
    num_tiles = _cdiv(b16, tb)
    tb = _round_up(_cdiv(b16, num_tiles), SUB_B)
    b_pad = tb * num_tiles
    if b_pad != B:
        x = jnp.pad(x, ((0, b_pad - B), (0, 0)))

    grid = (num_tiles,)

    flops = 2 * b_pad * (in_size * h_pad + h_pad * h_pad + h_pad * o_pad)
    bytes_accessed = (b_pad * in_size * 2           # x (bf16)
                      + b_pad * o_pad * 2           # out (bf16)
                      + (w1.size + w2.size + w3.size) * 2
                      + biases.size * 4)
    cost = pl.CostEstimate(flops=flops,
                           bytes_accessed=bytes_accessed,
                           transcendentals=2 * b_pad * h_pad)

    out = pl.pallas_call(
        policy_net_kernel,
        out_shape=jax.ShapeDtypeStruct((b_pad, o_pad), jnp.bfloat16),
        grid_spec=pltpu.PrefetchScalarGridSpec(
            num_scalar_prefetch=0,
            grid=grid,
            in_specs=[
                pl.BlockSpec((tb, in_size), lambda i: (i, 0)),      # x: batch-tiled
                # Weights / packed biases: constant block index -> fetched once
                # and kept VMEM-resident across all batch tiles.
                pl.BlockSpec((in_size, h_pad), lambda i: (0, 0)),
                pl.BlockSpec((h_pad, h_pad), lambda i: (0, 0)),
                pl.BlockSpec((h_pad, o_pad), lambda i: (0, 0)),
                pl.BlockSpec((8, o_pad), lambda i: (0, 0)),         # packed biases
            ],
            out_specs=pl.BlockSpec((tb, o_pad), lambda i: (i, 0)),
        ),
        compiler_params=pltpu.CompilerParams(
            dimension_semantics=("parallel",)),   # shard batch tiles across TCs
        cost_estimate=cost,
    )(x, w1, w2, w3, biases)

    # Strip batch padding and the lane padding of the output dim; f32 for use.
    return out[:B, :out_size].astype(jnp.float32)


# ------------------------- deterministic parameter init -------------------- #
def orthogonal(key, shape, gain):
    """Orthogonal init (mirrors torch.nn.init.orthogonal_ semantics)."""
    rows, cols = shape
    flat_shape = (rows, cols) if rows >= cols else (cols, rows)
    a = jax.random.normal(key, flat_shape, dtype=jnp.float32)
    q, r = jnp.linalg.qr(a)
    d = jnp.diagonal(r)
    q = q * jnp.where(d >= 0, 1.0, -1.0)       # safe sign convention (sign(0)=+1)
    if rows < cols:
        q = q.T
    return gain * q


def init_policy_net(key, input_size, output_size, hidden_size=64):
    """Unpadded f32 parameters, stored pre-transposed as [in, out] so the
    forward pass is y = x @ W + b (== PyTorch's x @ W.T + b)."""
    k1, k2, k3 = jax.random.split(key, 3)
    std = float(np.sqrt(2))
    w1 = orthogonal(k1, (hidden_size, input_size), std).T
    b1 = jnp.zeros((1, hidden_size), jnp.float32)
    w2 = orthogonal(k2, (hidden_size, hidden_size), std).T
    b2 = jnp.zeros((1, hidden_size), jnp.float32)
    w3 = orthogonal(k3, (output_size, hidden_size), 0.01).T
    b3 = jnp.zeros((1, output_size), jnp.float32)
    return (w1, b1, w2, b2, w3, b3)


def pad_params(params, hidden_pad=LANE, out_pad=LANE):
    """Zero-pad hidden/output dims to lane width; cast weights to bf16 for the
    MXU. The three f32 biases are packed into one (8, 128) array (rows 0..2).
    Zero padding keeps the math identical: padded hidden columns stay exactly 0
    through tanh, padded output columns are sliced off in the wrapper."""
    w1, b1, w2, b2, w3, b3 = params
    in_size = w1.shape[0]
    assert hidden_pad == out_pad  # packed-bias array uses one lane width

    def pad2(a, r, c):
        return jnp.pad(a, ((0, r - a.shape[0]), (0, c - a.shape[1])))

    w1p = pad2(w1, in_size, hidden_pad).astype(jnp.bfloat16)
    w2p = pad2(w2, hidden_pad, hidden_pad).astype(jnp.bfloat16)
    w3p = pad2(w3, hidden_pad, out_pad).astype(jnp.bfloat16)

    biases = jnp.zeros((8, out_pad), jnp.float32)
    biases = biases.at[0, :b1.shape[1]].set(b1[0])
    biases = biases.at[1, :b2.shape[1]].set(b2[0])
    biases = biases.at[2, :b3.shape[1]].set(b3[0])
    return (w1p, w2p, w3p, biases)


# ----------------------------------- main ----------------------------------- #
if __name__ == "__main__":
    key = jax.random.PRNGKey(0)
    k_params, k_x = jax.random.split(key)

    batch = 8
    input_size = 16
    output_size = 6
    hidden_size = 64

    params = init_policy_net(k_params, input_size, output_size, hidden_size)
    padded = pad_params(params)
    x = jax.random.normal(k_x, (batch, input_size), dtype=jnp.float32)

    logits = policy_net_forward(x, padded, output_size)
    jax.block_until_ready(logits)
    assert logits.shape == (batch, output_size)

    # Pure-JAX f32 reference (same math as the PyTorch forward). Tolerance is
    # loosened because the kernel uses bf16 MXU operands and bf16 logits.
    w1, b1, w2, b2, w3, b3 = params
    ref = jnp.tanh(x @ w1 + b1)
    ref = jnp.tanh(ref @ w2 + b2)
    ref = ref @ w3 + b3
    np.testing.assert_allclose(np.asarray(logits), np.asarray(ref),
                               rtol=2e-2, atol=2e-2)

    # TODO(synk): PolicyNet.play()'s Categorical sampling is host-side control
    # logic, intentionally not implemented as a kernel.
    print("KERNEL_OK")
</pallas_src>

<mosaic_0001>
module attributes {stable_mosaic.version = 11 : i64} {
  func.func @policy_net_kernel(%arg0: i32, %arg1: memref<16x16xbf16, #tpu.memory_space<vmem>>, %arg2: memref<16x128xbf16, #tpu.memory_space<vmem>>, %arg3: memref<128x128xbf16, #tpu.memory_space<vmem>>, %arg4: memref<128x128xbf16, #tpu.memory_space<vmem>>, %arg5: memref<8x128xf32, #tpu.memory_space<vmem>>, %arg6: memref<16x128xbf16, #tpu.memory_space<vmem>>) attributes {dimension_semantics = [#tpu.dimension_semantics<parallel>], iteration_bounds = array<i64: 1>, scalar_prefetch = 0 : i64, scratch_operands = 0 : i64, tpu.core_type = #tpu.core_type<tc>, window_params = [{transform_indices = @transform_0, window_bounds = array<i64: 16, 16>}, {pipeline_mode = #tpu.pipeline_mode<synchronous>, transform_indices = @transform_1, window_bounds = array<i64: 16, 128>}, {pipeline_mode = #tpu.pipeline_mode<synchronous>, transform_indices = @transform_2, window_bounds = array<i64: 128, 128>}, {pipeline_mode = #tpu.pipeline_mode<synchronous>, transform_indices = @transform_3, window_bounds = array<i64: 128, 128>}, {pipeline_mode = #tpu.pipeline_mode<synchronous>, transform_indices = @transform_4, window_bounds = array<i64: 8, 128>}, {transform_indices = @transform_5, window_bounds = array<i64: 16, 128>}]} {
    %c0 = arith.constant 0 : index
    %c0_0 = arith.constant 0 : index
    %0 = vector.load %arg5[%c0, %c0_0] : memref<8x128xf32, #tpu.memory_space<vmem>>, vector<1x128xf32>
    %c1 = arith.constant 1 : index
    %c0_1 = arith.constant 0 : index
    %1 = vector.load %arg5[%c1, %c0_1] : memref<8x128xf32, #tpu.memory_space<vmem>>, vector<1x128xf32>
    %c2 = arith.constant 2 : index
    %c0_2 = arith.constant 0 : index
    %2 = vector.load %arg5[%c2, %c0_2] : memref<8x128xf32, #tpu.memory_space<vmem>>, vector<1x128xf32>
    %c0_3 = arith.constant 0 : index
    %c0_4 = arith.constant 0 : index
    %3 = vector.load %arg1[%c0_3, %c0_4] : memref<16x16xbf16, #tpu.memory_space<vmem>>, vector<16x16xbf16>
    %c0_5 = arith.constant 0 : index
    %c0_6 = arith.constant 0 : index
    %4 = vector.load %arg2[%c0_5, %c0_6] : memref<16x128xbf16, #tpu.memory_space<vmem>>, vector<16x128xbf16>
    %cst = arith.constant dense<0.000000e+00> : vector<16x128xf32>
    %5 = tpu.matmul %3, %4, %cst {dimension_numbers = #tpu.dot_dimension_numbers<[1], [0], [0], [1], [0, 0, 1, 1], [], []>} : vector<16x16xbf16>, vector<16x128xbf16>, vector<16x128xf32> -> vector<16x128xf32>
    %6 = vector.broadcast %0 : vector<1x128xf32> to vector<16x128xf32>
    %7 = arith.addf %5, %6 : vector<16x128xf32>
    %8 = math.tanh %7 : vector<16x128xf32>
    %9 = arith.truncf %8 : vector<16x128xf32> to vector<16x128xbf16>
    %c0_7 = arith.constant 0 : index
    %c0_8 = arith.constant 0 : index
    %10 = vector.load %arg3[%c0_7, %c0_8] : memref<128x128xbf16, #tpu.memory_space<vmem>>, vector<128x128xbf16>
    %cst_9 = arith.constant dense<0.000000e+00> : vector<16x128xf32>
    %11 = tpu.matmul %9, %10, %cst_9 {dimension_numbers = #tpu.dot_dimension_numbers<[1], [0], [0], [1], [0, 0, 1, 1], [], []>} : vector<16x128xbf16>, vector<128x128xbf16>, vector<16x128xf32> -> vector<16x128xf32>
    %12 = vector.broadcast %1 : vector<1x128xf32> to vector<16x128xf32>
    %13 = arith.addf %11, %12 : vector<16x128xf32>
    %14 = math.tanh %13 : vector<16x128xf32>
    %15 = arith.truncf %14 : vector<16x128xf32> to vector<16x128xbf16>
    %c0_10 = arith.constant 0 : index
    %c0_11 = arith.constant 0 : index
    %16 = vector.load %arg4[%c0_10, %c0_11] : memref<128x128xbf16, #tpu.memory_space<vmem>>, vector<128x128xbf16>
    %cst_12 = arith.constant dense<0.000000e+00> : vector<16x128xf32>
    %17 = tpu.matmul %15, %16, %cst_12 {dimension_numbers = #tpu.dot_dimension_numbers<[1], [0], [0], [1], [0, 0, 1, 1], [], []>} : vector<16x128xbf16>, vector<128x128xbf16>, vector<16x128xf32> -> vector<16x128xf32>
    %18 = vector.broadcast %2 : vector<1x128xf32> to vector<16x128xf32>
    %19 = arith.addf %17, %18 : vector<16x128xf32>
    %20 = arith.truncf %19 : vector<16x128xf32> to vector<16x128xbf16>
    %c0_13 = arith.constant 0 : index
    %c0_14 = arith.constant 0 : index
    %21 = vector.load %arg6[%c0_13, %c0_14] : memref<16x128xbf16, #tpu.memory_space<vmem>>, vector<16x128xbf16>
    tpu.vector_store %arg6[%c0_13, %c0_14], %20 {strides = array<i32>} : memref<16x128xbf16, #tpu.memory_space<vmem>>, vector<16x128xbf16>,
    return
  }
  func.func @transform_0(%arg0: i32) -> (i32, i32) {
    %c0_i32 = arith.constant 0 : i32
    %c0_i32_0 = arith.constant 0 : i32
    return %arg0, %c0_i32 : i32, i32
  }
  func.func @transform_1(%arg0: i32) -> (i32, i32) {
    %c0_i32 = arith.constant 0 : i32
    %c0_i32_0 = arith.constant 0 : i32
    %c0_i32_1 = arith.constant 0 : i32
    return %c0_i32, %c0_i32_0 : i32, i32
  }
  func.func @transform_2(%arg0: i32) -> (i32, i32) {
    %c0_i32 = arith.constant 0 : i32
    %c0_i32_0 = arith.constant 0 : i32
    %c0_i32_1 = arith.constant 0 : i32
    return %c0_i32, %c0_i32_0 : i32, i32
  }
  func.func @transform_3(%arg0: i32) -> (i32, i32) {
    %c0_i32 = arith.constant 0 : i32
    %c0_i32_0 = arith.constant 0 : i32
    %c0_i32_1 = arith.constant 0 : i32
    return %c0_i32, %c0_i32_0 : i32, i32
  }
  func.func @transform_4(%arg0: i32) -> (i32, i32) {
    %c0_i32 = arith.constant 0 : i32
    %c0_i32_0 = arith.constant 0 : i32
    %c0_i32_1 = arith.constant 0 : i32
    return %c0_i32, %c0_i32_0 : i32, i32
  }
  func.func @transform_5(%arg0: i32) -> (i32, i32) {
    %c0_i32 = arith.constant 0 : i32
    %c0_i32_0 = arith.constant 0 : i32
    return %arg0, %c0_i32 : i32, i32
  }
}

</mosaic_0001>

<bundles_post_ra>
// kernel: tpu_custom_call.1
= control target key start
LH: loop header
LB: loop body
LE: loop exit
PB: predicated region body
PF: predicated region fallthrough
CT: control target
= control target key end

     0   :  { %10 = vsyncpa [#allocation3], 0  ;;  %s804_s0 = inlined_call_operand.hbm [shape: bf16[16,16], index: 0, kind: input, shape index: {}]   ;;  %s805_s1 = inlined_call_operand.hbm [shape: bf16[16,128], index: 1, kind: input, shape index: {}]   ;;  %s806_s2 = inlined_call_operand.hbm [shape: bf16[128,128], index: 2, kind: input, shape index: {}]   ;;  %s807_s3 = inlined_call_operand.hbm [shape: bf16[128,128], index: 3, kind: input, shape index: {}]   ;;  %s808_s4 = inlined_call_operand.vmem [shape: f32[8,128], index: 4, kind: input, shape index: {}]   ;;  %s809_s5 = inlined_call_operand.hbm [shape: bf16[16,128], index: 5, kind: output, shape index: {}]  }
   0x1   :  { %11 = vsyncpa [#allocation6], 0 }
   0x2   :  { %12 = vsyncpa [#allocation9], 0 }
   0x3   :  { %13 = vsyncpa [#allocation4], 0  ;;  %s647_s18 = smov [#allocation5]   ;;  %s648_s20 = smov [#allocation2]  }
   0x4   :  { %s31_s19 = sshll.u32 %s647_s18, 4  ;;  %s19_s21 = sshll.u32 %s648_s20, 4  ;;  %s32_s19 = int_to_ptr.vmem [resolvable:$true] %s31_s19  ;;  %s686_s21 = int_to_ptr.vmem [resolvable:$true] %s19_s21 }
   0x5   :  { %s529_s24 = scalar_lea.hbm %s805_s1, 128 }
   0x6   :  { %p530_p0 = scmp.ne.s32.totalorder %s805_s1, %s529_s24  ;;  %p533_p1 = scmp.lt.u32.totalorder %s529_s24, %s805_s1 }
   0x8   :  { %p535_p2 = pnand %p533_p1, %p530_p0 }
   0xa   :  { %538 = shalt.err (!%p535_p2)
}
   0xb   :  { %s539_s29 = scalar_lea.vmem %s32_s19, 128  ;;  %p544_p4 = scmp.lt.s32.totalorder %s32_s19, %s32_s19 }
   0xc   :  { %p540_p3 = scmp.ne.s32.totalorder %s32_s19, %s539_s29  ;;  %p545_p5 = scmp.lt.s32.totalorder %s539_s29, %s539_s29 }
   0xe   :  { %p546_p6 = por %p545_p5, %p544_p4 }
  0x10   :  { %p547_p7 = pnand %p546_p6, %p540_p3 }
  0x12   :  { %550 = shalt.err (!%p547_p7)
}
  0x13   :  { %s649_s30 = smov 64   ;;  %s650_s6 = smov 4  }
  0x14   :  { %37 = dma.hbm_to_vmem [thread:$0]  %s805_s1, 128, %s32_s19, [#allocation6], %s649_s30, %s649_s30, %s650_s6  }
  0x15   :  { %s551_s11 = scalar_lea.hbm %s804_s0, 128 }
  0x16   :  { %p552_p8 = scmp.ne.s32.totalorder %s804_s0, %s551_s11  ;;  %p555_p9 = scmp.lt.u32.totalorder %s551_s11, %s804_s0 }
  0x18   :  { %p557_p10 = pnand %p555_p9, %p552_p8 }
  0x1a   :  { %560 = shalt.err (!%p557_p10)
}
  0x1b   :  { %s561_s16 = scalar_lea.vmem %s686_s21, 128  ;;  %p566_p12 = scmp.lt.s32.totalorder %s686_s21, %s686_s21 }
  0x1c   :  { %p562_p11 = scmp.ne.s32.totalorder %s686_s21, %s561_s16  ;;  %p567_p13 = scmp.lt.s32.totalorder %s561_s16, %s561_s16 }
  0x1e   :  { %p568_p0 = por %p567_p13, %p566_p12 }
  0x20   :  { %p569_p1 = pnand %p568_p0, %p562_p11 }
  0x22   :  { %572 = shalt.err (!%p569_p1)
}
  0x23   :  { %25 = dma.hbm_to_vmem [thread:$0]  %s804_s0, 128, %s686_s21, [#allocation3], %s649_s30, %s649_s30, %s650_s6  }
  0x24   :  { %s651_s18 = smov [#allocation7]   ;;  %s652_s20 = smov [#allocation8]  }
  0x25   :  { %s43_s19 = sshll.u32 %s651_s18, 4  ;;  %s55_s22 = sshll.u32 %s652_s20, 4  ;;  %s44_s19 = int_to_ptr.vmem [resolvable:$true] %s43_s19  ;;  %s723_s22 = int_to_ptr.vmem [resolvable:$true] %s55_s22 }
  0x26   :  { %s573_s25 = scalar_lea.hbm %s806_s2, 1024 }
  0x27   :  { %p574_p2 = scmp.ne.s32.totalorder %s806_s2, %s573_s25  ;;  %p577_p3 = scmp.lt.u32.totalorder %s573_s25, %s806_s2 }
  0x29   :  { %p579_p4 = pnand %p577_p3, %p574_p2 }
  0x2b   :  { %582 = shalt.err (!%p579_p4)
}
  0x2c   :  { %s583_s0 = scalar_lea.vmem %s44_s19, 1024  ;;  %p588_p6 = scmp.lt.s32.totalorder %s44_s19, %s44_s19 }
  0x2d   :  { %p584_p5 = scmp.ne.s32.totalorder %s44_s19, %s583_s0  ;;  %p589_p7 = scmp.lt.s32.totalorder %s583_s0, %s583_s0 }
  0x2f   :  { %p590_p8 = por %p589_p7, %p588_p6 }
  0x31   :  { %p591_p9 = pnand %p590_p8, %p584_p5 }
  0x33   :  { %594 = shalt.err (!%p591_p9)
}
  0x34   :  { %49 = dma.hbm_to_vmem [thread:$0]  %s806_s2, 1024, %s44_s19, [#allocation6], %s649_s30, %s649_s30, %s650_s6  }
  0x35   :  { %s595_s10 = scalar_lea.hbm %s807_s3, 1024 }
  0x36   :  { %p596_p10 = scmp.ne.s32.totalorder %s807_s3, %s595_s10  ;;  %p599_p11 = scmp.lt.u32.totalorder %s595_s10, %s807_s3 }
  0x38   :  { %p601_p12 = pnand %p599_p11, %p596_p10 }
  0x3a   :  { %604 = shalt.err (!%p601_p12)
}
  0x3b   :  { %s605_s15 = scalar_lea.vmem %s723_s22, 1024  ;;  %p610_p0 = scmp.lt.s32.totalorder %s723_s22, %s723_s22 }
  0x3c   :  { %p606_p13 = scmp.ne.s32.totalorder %s723_s22, %s605_s15  ;;  %p611_p1 = scmp.lt.s32.totalorder %s605_s15, %s605_s15 }
  0x3e   :  { %p612_p2 = por %p611_p1, %p610_p0 }
  0x40   :  { %p613_p3 = pnand %p612_p2, %p606_p13 }
  0x42   :  { %616 = shalt.err (!%p613_p3)
}
  0x43   :  { %61 = dma.hbm_to_vmem [thread:$0]  %s807_s3, 1024, %s723_s22, [#allocation9], %s649_s30, %s649_s30, %s650_s6  }
  0x44   :  { %639 = dma.done.wait [#allocation3], 128  }
  0x45   :  { %640 = vsyncadd [#allocation3], 4294967168 }
  0x46   :  { %641 = dma.done.wait [#allocation6], 1152  }
  0x47   :  { %642 = vsyncadd [#allocation6], 4294966144 }
  0x48   :  { %643 = dma.done.wait [#allocation9], 1024  }
  0x49   :  { %644 = vsyncadd [#allocation9], 4294966272  ;;  %v653_v0 = vmov 0.0   ;;  %vm654_vm0 = vmmov 0   ;;  %v503_v1 = vld [vmem:[#allocation5] sm:$0xff]   ;;  %v504_v2 = vld [vmem:[#allocation2] sm:$0xff]  }
  0x4a   :  { %448 = vmatprep.subr.bf16.mxu0 %v653_v0  ;;  %450 = vmatprep.mubr.msk.bf16.mxu0 %vm654_vm0, %v653_v0  ;;  %vm99_vm1 = vcmask 130048   ;;  %v505_v3 = vld [vmem:[#allocation7] sm:$0xff]   ;;  %v506_v4 = vld [vmem:[#allocation7 + $0x8] sm:$0xff]   ;;  %v507_v5 = vld [vmem:[#allocation7 + $0x10] sm:$0xff]   ;;  %s655_s22 = smov [#allocation10]  }
  0x4b   :  { %454 = vmatprep.subr.bf16.mxu1 %v653_v0  ;;  %470 = vmatprep.mubr.msk.bf16.mxu1 %vm654_vm0, %v653_v0  ;;  %v508_v6 = vld [vmem:[#allocation7 + $0x18] sm:$0xff]   ;;  %v509_v7 = vld [vmem:[#allocation7 + $0x20] sm:$0xff]   ;;  %v510_v8 = vld [vmem:[#allocation7 + $0x28] sm:$0xff]   ;;  %s383_s23 = sshll.u32 %s655_s22, 4  ;;  %s384_s23 = int_to_ptr.vmem [resolvable:$true] %s383_s23 }
  0x4c   :  { %449 = vmatpush3.bf16.msra.mxu0 %v503_v1  ;;  %455 = vmatpush3.bf16.msra.mxu1 %v505_v3  ;;  %v511_v9 = vld [vmem:[#allocation7 + $0x30] sm:$0xff]   ;;  %v512_v10 = vld [vmem:[#allocation7 + $0x38] sm:$0xff]   ;;  %v513_v11 = vld [vmem:[#allocation8] sm:$0xff]   ;;  %s617_s24 = scalar_lea.vmem %s384_s23, 128  ;;  %p622_p5 = scmp.lt.s32.totalorder %s384_s23, %s384_s23 }
  0x4d   :  { %474 = vmatprep.subr.bf16.mxu0 %v653_v0  ;;  %456 = vmatprep.subr.bf16.mxu1 %v653_v0  ;;  %v514_v12 = vld [vmem:[#allocation8 + $0x8] sm:$0xff]   ;;  %v515_v13 = vld [vmem:[#allocation8 + $0x10] sm:$0xff]   ;;  %v516_v14 = vld [vmem:[#allocation8 + $0x18] sm:$0xff]   ;;  %p618_p4 = scmp.ne.s32.totalorder %s384_s23, %s617_s24  ;;  %p623_p6 = scmp.lt.s32.totalorder %s617_s24, %s617_s24 }
  0x4e   :  { %v397_v15 = vld [vmem:[%s808_s4] ss:$0 sm:$0xff]  ;;  %v517_v25 = vld [vmem:[#allocation8 + $0x20] sm:$0xff]   ;;  %v518_v26 = vld [vmem:[#allocation8 + $0x28] sm:$0xff]  }
  0x4f   :  { %451 = vmatmul.mubr.msk.bf16.vlgmr.msra.gmra.mrb[0].mxu0 %vm99_vm1, %v504_v2  ;;  %v519_v27 = vld [vmem:[#allocation8 + $0x30] sm:$0xff]   ;;  %v520_v28 = vld [vmem:[#allocation8 + $0x38] sm:$0xff]   ;;  %p624_p7 = por %p623_p6, %p622_p5 }
  0x50   :  { %490 = vmatprep.mubr.msk.bf16.mxu0 %vm654_vm0, %v653_v0  ;;  %457 = vmatpush3.bf16.msra.mxu1 %v506_v4  ;;  %v401_v29 = vld [vmem:[%s808_s4 + $0x1] ss:$0 sm:$0xff]  ;;  %v410_v39 = vld [vmem:[%s808_s4 + $0x2] ss:$0 sm:$0xff] }
  0x51   :  { %458 = vmatprep.subr.bf16.mxu1 %v653_v0  ;;  %475 = vmatpush3.bf16.msra.mxu0 %v513_v11  ;;  %p625_p8 = pnand %p624_p7, %p618_p4 }
  0x52   :  { %476 = vmatprep.subr.bf16.mxu0 %v653_v0 }
  0x54   :  { %459 = vmatpush3.bf16.msra.mxu1 %v507_v5 }
  0x55   :  { %460 = vmatprep.subr.bf16.mxu1 %v653_v0  ;;  %477 = vmatpush3.bf16.msra.mxu0 %v514_v12 }
  0x56   :  { %478 = vmatprep.subr.bf16.mxu0 %v653_v0 }
  0x58   :  { %461 = vmatpush3.bf16.msra.mxu1 %v508_v6 }
  0x59   :  { %462 = vmatprep.subr.bf16.mxu1 %v653_v0  ;;  %479 = vmatpush3.bf16.msra.mxu0 %v515_v13 }
  0x5a   :  { %480 = vmatprep.subr.bf16.mxu0 %v653_v0 }
  0x5c   :  { %463 = vmatpush3.bf16.msra.mxu1 %v509_v7 }
  0x5d   :  { %464 = vmatprep.subr.bf16.mxu1 %v653_v0  ;;  %481 = vmatpush3.bf16.msra.mxu0 %v516_v14 }
  0x5e   :  { %482 = vmatprep.subr.bf16.mxu0 %v653_v0 }
  0x60   :  { %465 = vmatpush3.bf16.msra.mxu1 %v510_v8 }
  0x61   :  { %466 = vmatprep.subr.bf16.mxu1 %v653_v0  ;;  %483 = vmatpush3.bf16.msra.mxu0 %v517_v25 }
  0x62   :  { %484 = vmatprep.subr.bf16.mxu0 %v653_v0 }
  0x64   :  { %467 = vmatpush3.bf16.msra.mxu1 %v511_v9 }
  0x65   :  { %468 = vmatprep.subr.bf16.mxu1 %v653_v0  ;;  %485 = vmatpush3.bf16.msra.mxu0 %v518_v26 }
  0x66   :  { %486 = vmatprep.subr.bf16.mxu0 %v653_v0 }
  0x68   :  { %469 = vmatpush3.bf16.msra.mxu1 %v512_v10 }
  0x69   :  { %487 = vmatpush3.bf16.msra.mxu0 %v519_v27 }
  0x6a   :  { %488 = vmatprep.subr.bf16.mxu0 %v653_v0 }
  0x6d   :  { %489 = vmatpush3.bf16.msra.mxu0 %v520_v28 }
 0x122   :  { %v137_v16 = vpop.f32.mrb[0].mxu0 }
 0x123   :  { %v138_v17 = vadd.f32 %v397_v15, %v137_v16  ;;  %v452_v18 = vpop.f32.mrb[1].mxu0 }
 0x124   :  { %v140_v19 = vpop.f32.mrb[2].mxu0 }
 0x125   :  { %v141_v20 = vadd.f32 %v397_v15, %v140_v19  ;;  %v453_v21 = vpop.f32.mrb[3].mxu0  ;;  %521 = vtanh.f32 %v138_v17 }
 0x127   :  { %523 = vtanh.f32 %v141_v20 }
 0x12f   :  { %v522_v22 = vpop.eup %521 }
 0x131   :  { %v524_v23 = vpop.eup %523 }
 0x132   :  { %v146_v24 = vpack.c.bf16 %v524_v23, %v522_v22 }
 0x134   :  { %471 = vmatmul.mubr.bf16.vlgmr.msra.gmra.mrb[0].mxu1 %v146_v24 }
 0x207   :  { %v249_v30 = vpop.f32.mrb[0].mxu1 }
 0x208   :  { %v250_v31 = vadd.f32 %v401_v29, %v249_v30  ;;  %v472_v32 = vpop.f32.mrb[1].mxu1 }
 0x209   :  { %v252_v33 = vpop.f32.mrb[2].mxu1 }
 0x20a   :  { %v253_v34 = vadd.f32 %v401_v29, %v252_v33  ;;  %v473_v35 = vpop.f32.mrb[3].mxu1  ;;  %525 = vtanh.f32 %v250_v31 }
 0x20c   :  { %527 = vtanh.f32 %v253_v34 }
 0x214   :  { %v526_v36 = vpop.eup %525 }
 0x216   :  { %v528_v37 = vpop.eup %527 }
 0x217   :  { %v258_v38 = vpack.c.bf16 %v528_v37, %v526_v36 }
 0x219   :  { %491 = vmatmul.mubr.bf16.vlgmr.msra.gmra.mrb[4].mxu0 %v258_v38 }
 0x2ec   :  { %v361_v40 = vpop.f32.mrb[4].mxu0 }
 0x2ed   :  { %v492_v41 = vpop.f32.mrb[5].mxu0  ;;  %v362_v43 = vadd.f32 %v410_v39, %v361_v40 }
 0x2ee   :  { %v364_v42 = vpop.f32.mrb[6].mxu0 }
 0x2ef   :  { %v365_v44 = vadd.f32 %v410_v39, %v364_v42  ;;  %v493_v45 = vpop.f32.mrb[7].mxu0 }
 0x2f1   :  { %v426_v46 = vpack.c.bf16 %v365_v44, %v362_v43 }
 0x2f3   :  { %427 = vst [vmem:[#allocation10] sm:$0xff] %v426_v46  }
 0x2f4   :  { %628 = shalt.err (!%p625_p8)
}
 0x2f5   :  { %s629_s26 = scalar_lea.hbm %s809_s5, 128 }
 0x2f6   :  { %p630_p9 = scmp.ne.s32.totalorder %s809_s5, %s629_s26  ;;  %p633_p10 = scmp.lt.u32.totalorder %s629_s26, %s809_s5 }
 0x2f8   :  { %p635_p11 = pnand %p633_p10, %p630_p9 }
 0x2fa   :  { %638 = shalt.err (!%p635_p11)
}
 0x2fb   :  { %389 = dma.vmem_to_hbm [thread:$0]  %s384_s23, 128, %s809_s5, [#allocation4], %s649_s30, %s649_s30, %s650_s6  }
 0x2fc   :  { %645 = dma.done.wait [#allocation4], 128  }
 0x2fd   :  { %646 = vsyncadd [#allocation4], 4294967168 }
 0x2fe   :  { %393 = vsyncpa [#allocation3], 1 }
 0x2ff   :  { %394 = vsyncpa [#allocation6], 1 }
 0x300   :  { %395 = vsyncpa [#allocation9], 1 }
 0x301   :  { %396 = vsyncpa [#allocation4], 1 }

</bundles_post_ra>
